<compile_context>
chip_gen: v7x
topology: tpu7x:2x2x1
jax: 0.10.0
libtpu: 0.0.40
codegen_flags: <defaults>
</compile_context>

<pallas_src>
import functools
import math

import jax
import jax.numpy as jnp
from jax.experimental import pallas as pl
from jax.experimental.pallas import tpu as pltpu


def _round_up(x, m):
    return (x + m - 1) // m * m


def _confidence_attn_kernel(
    km_ref,    # (1, Bt, S)      key_mask rows (1.0 = valid, 0.0 = pad), f32
    prob_ref,  # (1, Bt, S)      prob rows, f32
    x_ref,     # (1, Bt, S, D)   `batch` / `all_v` / `value`, bf16
    wf_ref,    # (D, 2*Dp+128)   fused weight [Wq*s |pad| Wk |pad| c | wcx |pad], bf16
    bf_ref,    # (1, 2*Dp+128)   fused bias, f32
    wce_ref,   # SMEM (2,)       [prob coefficient, combine bias + bo.wca]
    out_ref,   # (1, 1, Bt*S)    sigmoid(logit), f32, lane-dense slab
    *, dp,
):
    x = x_ref[0]                                   # (Bt, S, D) bf16
    bt, seq, d = x.shape
    dout = wf_ref.shape[-1]

    # --- single fused projection matmul (bf16 operands, f32 accumulation) ----
    x2 = x.reshape(bt * seq, d)
    r = jnp.dot(x2, wf_ref[...], preferred_element_type=jnp.float32) + bf_ref[...]
    r = r.reshape(bt, seq, dout)                   # (Bt, S, 2*Dp+128) f32

    # Lane-tile-aligned slices (dp is a multiple of 128; pad columns are zero).
    q = r[..., :dp].astype(jnp.bfloat16)           # (Bt, S, Dp) -- scale already folded in
    k = r[..., dp:2 * dp].astype(jnp.bfloat16)     # (Bt, S, Dp)
    c_row = r[..., 2 * dp]                         # (Bt, S) value/out_proj/wca path per key
    lx = r[..., 2 * dp + 1]                        # (Bt, S) all_v @ wcx

    # --- single-head attention scores + key mask (f32) ------------------------
    scores = jnp.einsum('bqd,bkd->bqk', q, k,
                        preferred_element_type=jnp.float32)     # (Bt, S, S)
    km = km_ref[0]                                 # (Bt, S)
    scores = jnp.where(km[:, None, :] < 0.5, -jnp.inf, scores)

    # --- softmax fused directly with the rank-1 value reduction ---------------
    #   att_c = (sum_k e_k * c_k) / (sum_k e_k)   -- `attn` is never materialised.
    m = jnp.max(scores, axis=-1, keepdims=True)
    e = jnp.exp(scores - m)                        # (Bt, S, S)
    den = jnp.sum(e, axis=-1)                      # (Bt, S)
    num = jnp.sum(e * c_row[:, None, :], axis=-1)  # (Bt, S)
    att_c = num * pl.reciprocal(den, approx=True)  # (Bt, S)  (EUP slot)

    # --- combine: logit = x@wcx + folded-attention + prob * w_prob + bias -----
    logit = att_c + lx + prob_ref[0] * wce_ref[0] + wce_ref[1]
    # PyTorch: a query row whose own key_mask entry is 0 is fully masked ->
    # softmax over all -inf -> NaN. Reproduce that behaviour exactly.
    logit = jnp.where(km < 0.5, jnp.nan, logit)

    # Lane-dense writeback: one (Bt*S,) slab instead of a (Bt, S<128) masked store.
    out_ref[0, 0] = jax.nn.sigmoid(logit).reshape(bt * seq)


def _chip_info():
    """Returns (vmem_capacity_bytes, mxu_m_width, tensorcores_per_chip)."""
    vmem = None
    try:
        vmem = int(pltpu.get_tpu_info().vmem_capacity_bytes)
    except Exception:
        vmem = None
    kind = ""
    try:
        kind = jax.devices()[0].device_kind.lower()
    except Exception:
        pass
    if "v6" in kind:                                  # v6e: 1 TC, 256-wide MXU, 128 MiB
        return (vmem or (128 << 20), 256, 1)
    if "v5" in kind and ("lite" in kind or "v5e" in kind):   # v5e: 1 TC, 128-wide MXU
        return (vmem or (128 << 20), 128, 1)
    if "v5" in kind:                                  # v5p: 2 TCs (megacore)
        return (vmem or (128 << 20), 128, 2)
    if "v4" in kind or "v3" in kind or "v2" in kind:
        return (vmem or (128 << 20), 128, 2)
    # v7x or unknown: conservative (64 MiB VMEM per TC, 256-wide MXU, 2 TCs).
    return (vmem or (64 << 20), 256, 2)


def _vmem_need_bytes(bt, S, D, dp, dout):
    """Per-step VMEM footprint estimate (double-buffered streams + temporaries)."""
    n = bt * S
    x_bufs = 2 * n * D * 2                 # x (bf16), double-buffered
    vec_bufs = 2 * 2 * n * 4               # key_mask + prob (f32), double-buffered
    out_bufs = 2 * n * 4                   # output slab (f32), double-buffered
    wts = 2 * (D * dout * 2 + dout * 4)    # fused weight/bias (constant index map)
    r_tmp = n * dout * 4                   # fused projection result (f32)
    qk_tmp = 2 * n * dp * 2                # bf16 q / k copies
    sc_tmp = 2 * bt * S * S * 4            # scores + exp temporaries (f32)
    misc = 8 * n * 4
    return x_bufs + vec_bufs + out_bufs + wts + r_tmp + qk_tmp + sc_tmp + misc


def _pick_block_b(B, S, D, dp, dout, vmem_hi, mxu_m, n_cores):
    """Batches per grid step, generation-aware (VMEM, MXU M-width, #TensorCores)."""
    if S % 8 != 0:
        return 1   # keep the in-kernel (Bt*S, D) reshape layout-trivial
    divisors = [d for d in range(1, B + 1) if B % d == 0]
    fits = [d for d in divisors
            if _vmem_need_bytes(d, S, D, dp, dout) + (6 << 20) <= vmem_hi]
    if not fits:
        return 1

    def prefer(cands, pred):
        sub = [c for c in cands if pred(c)]
        return sub if sub else cands

    cands = fits
    if n_cores >= 2:
        # Keep >=2 grid steps, balanced across TensorCores, on multi-TC chips.
        cands = prefer(cands, lambda d: (B // d) >= n_cores)
        cands = prefer(cands, lambda d: (B // d) % n_cores == 0)
    # Fill the MXU M dimension of the dominant fused projection when B allows it.
    cands = prefer(cands, lambda d: (d * S) % mxu_m == 0)
    return max(cands)


def confidence_model_attn(batch, key_mask, prob, params, block_b=None):
    """batch: (B, S, D), key_mask: (B, S), prob: (B, S) -> (B, S)."""
    B, S, D = batch.shape
    (wq, wk, wv, bq, bk, bv, wo, bo, wcx, wca, wce) = params
    f32 = jnp.float32

    dp = _round_up(D, 128)           # lane-tile-aligned q/k slice width
    dout = 2 * dp + 128              # [ q-tile | k-tile | (c, wcx, pad) tail tile ]
    scale = 1.0 / math.sqrt(D)

    # ---- algebraic folds (done once, outside the kernel) ---------------------
    # attn_output @ wca == (attn @ v) @ (Wo^T @ wca) + bo.wca  -> rank-1 value path.
    w2 = wo.astype(f32) @ wca.astype(f32)        # (D, 1) = Wo^T @ wca
    b2 = bo.astype(f32) @ wca.astype(f32)        # (1, 1) = bo . wca
    wv2 = wv.astype(f32) @ w2                    # (D, 1)
    bv2 = bv.astype(f32) @ w2                    # (1, 1)

    wf = jnp.zeros((D, dout), f32)
    wf = wf.at[:, :D].set(wq.astype(f32) * scale)      # softmax scale folded into Wq
    wf = wf.at[:, dp:dp + D].set(wk.astype(f32))
    wf = wf.at[:, 2 * dp:2 * dp + 1].set(wv2)
    wf = wf.at[:, 2 * dp + 1:2 * dp + 2].set(wcx.astype(f32))
    wf = wf.astype(jnp.bfloat16)

    bf = jnp.zeros((1, dout), f32)
    bf = bf.at[:, :D].set(bq.astype(f32) * scale)      # scale folded into bq too
    bf = bf.at[:, dp:dp + D].set(bk.astype(f32))
    bf = bf.at[:, 2 * dp:2 * dp + 1].set(bv2)

    wce2 = jnp.stack([wce[0].astype(f32), wce[1].astype(f32) + b2[0, 0]])

    # ---- generation-aware batch tiling + VMEM budget --------------------------
    vmem_cap, mxu_m, n_cores = _chip_info()
    vmem_hi = max(min(int(vmem_cap * 0.8), vmem_cap - (12 << 20)), 32 << 20)
    bt = block_b or _pick_block_b(B, S, D, dp, dout, vmem_hi, mxu_m, n_cores)
    assert B % bt == 0
    nb = B // bt
    vmem_limit = int(min(max(_vmem_need_bytes(bt, S, D, dp, dout) + (6 << 20),
                             32 << 20), vmem_hi))

    xr = batch.astype(jnp.bfloat16).reshape(nb, bt, S, D)
    kmr = key_mask.astype(f32).reshape(nb, bt, S)
    pr = prob.astype(f32).reshape(nb, bt, S)

    out = pl.pallas_call(
        functools.partial(_confidence_attn_kernel, dp=dp),
        out_shape=jax.ShapeDtypeStruct((nb, 1, bt * S), f32),
        grid=(nb,),
        in_specs=[
            pl.BlockSpec((1, bt, S), lambda b: (b, 0, 0)),        # key_mask rows
            pl.BlockSpec((1, bt, S), lambda b: (b, 0, 0)),        # prob rows
            pl.BlockSpec((1, bt, S, D), lambda b: (b, 0, 0, 0)),  # x (bf16)
            # Constant index maps -> the fused weight/bias are DMA'd only once
            # across the whole grid (they are loop-invariant).
            pl.BlockSpec((D, dout), lambda b: (0, 0)),            # fused weight (bf16)
            pl.BlockSpec((1, dout), lambda b: (0, 0)),            # fused bias (f32)
            pl.BlockSpec(memory_space=pltpu.MemorySpace.SMEM),    # combine scalars
        ],
        out_specs=pl.BlockSpec((1, 1, bt * S), lambda b: (b, 0, 0)),
        compiler_params=pltpu.CompilerParams(
            dimension_semantics=("parallel",),
            vmem_limit_bytes=vmem_limit,
        ),
    )(kmr, pr, xr, wf, bf, wce2)

    # PyTorch does `.squeeze()` on (B, S, 1); we return the lane-dense (B, S)
    # directly (a size-1 batch dim is intentionally NOT dropped).
    return out.reshape(B, S)


def init_params(key, qkv_len, label_len):
    """Deterministic synthetic parameters mirroring the module's __init__ shapes."""
    D = qkv_len
    assert label_len == qkv_len, "forward() only type-checks when label_len == qkv_len"
    ks = jax.random.split(key, 5)

    # nn.MultiheadAttention: in_proj_weight (3D, D), in_proj_bias (3D,),
    #                        out_proj Linear(D, D) (bias default-zero in torch).
    in_proj_w = jax.random.normal(ks[0], (3 * D, D), jnp.float32) * 0.1
    in_proj_b = jax.random.normal(ks[1], (3 * D,), jnp.float32) * 0.1
    out_proj_w = jax.random.normal(ks[2], (D, D), jnp.float32) * 0.1
    out_proj_b = jnp.zeros((D,), jnp.float32)

    # attn_combine = Linear(label_len + qkv_len + 1, 1) with init_weights:
    #   normal(std=0.1) for weight & bias, then weight[0][-1] = 1.0 (prob coeff).
    comb_w = (
        jax.random.normal(ks[3], (1, label_len + D + 1), jnp.float32) * 0.1
    ).at[0, -1].set(1.0)
    comb_b = jax.random.normal(ks[4], (1,), jnp.float32) * 0.1
    # NOTE: fc_layer exists in __init__ but is unused by forward(); omitted.
    # TODO(synk): dropout arg of the module is unused in forward(); not implemented.

    # Pre-transpose PyTorch (out, in) Linear weights so the kernel does x @ W.
    wq = in_proj_w[:D].T
    wk = in_proj_w[D:2 * D].T
    wv = in_proj_w[2 * D:].T
    bq = in_proj_b[:D].reshape(1, D)
    bk = in_proj_b[D:2 * D].reshape(1, D)
    bv = in_proj_b[2 * D:].reshape(1, D)
    wo = out_proj_w.T
    bo = out_proj_b.reshape(1, D)
    wcx = comb_w[0, :label_len].reshape(D, 1)
    wca = comb_w[0, label_len:label_len + D].reshape(D, 1)
    wce = jnp.array([comb_w[0, -1], comb_b[0]], dtype=jnp.float32)
    return (wq, wk, wv, bq, bk, bv, wo, bo, wcx, wca, wce)


def _reference(batch, key_mask, prob, params):
    """Pure-JAX fp32 reference of the original (unfused) module math."""
    wq, wk, wv, bq, bk, bv, wo, bo, wcx, wca, wce = params
    x = batch.astype(jnp.float32)
    km = key_mask.astype(jnp.float32)
    q = x @ wq + bq
    k = x @ wk + bk
    v = x @ wv + bv
    scale = 1.0 / math.sqrt(x.shape[-1])
    scores = jnp.einsum('bqd,bkd->bqk', q, k) * scale
    outer = km[:, :, None] * km[:, None, :]
    scores = jnp.where(outer < 0.5, -jnp.inf, scores)
    m = jnp.max(scores, axis=-1, keepdims=True)
    e = jnp.exp(scores - m)
    attn = e / jnp.sum(e, axis=-1, keepdims=True)
    ao = jnp.einsum('bqk,bkd->bqd', attn, v) @ wo + bo
    logit = x @ wcx + ao @ wca + prob[..., None] * wce[0] + wce[1]
    return jax.nn.sigmoid(logit)[..., 0]


if __name__ == "__main__":
    # Small shapes consistent with the module: (batch, seq, embed) with
    # label_len == qkv_len (defaults 768/768 shrunk to 32/32).
    B, S, D = 2, 8, 32
    key = jax.random.PRNGKey(0)
    k_x, k_p, k_w = jax.random.split(key, 3)

    batch = jax.random.normal(k_x, (B, S, D), jnp.float32)
    # key_mask: 1.0 = valid token, 0.0 = padding. Fully-masked rows yield NaN,
    # exactly as the PyTorch module does for those rows.
    key_mask = jnp.ones((B, S), jnp.float32).at[:, -2:].set(0.0)
    prob = jax.random.uniform(k_p, (B, S), jnp.float32)

    params = init_params(k_w, qkv_len=D, label_len=D)

    out = confidence_model_attn(batch, key_mask, prob, params)
    out = jax.block_until_ready(out)
    assert out.shape == (B, S)

    ref = _reference(batch, key_mask, prob, params)
    valid = key_mask > 0.5
    assert bool(jnp.all(jnp.isfinite(jnp.where(valid, out, 0.0))))
    assert bool(jnp.all(jnp.where(valid, (out > 0.0) & (out < 1.0), True)))
    err = float(jnp.max(jnp.abs(jnp.where(valid, out - ref, 0.0))))
    assert err < 2e-2, f"max abs error vs fp32 reference: {err}"
    print("KERNEL_OK")
</pallas_src>

<mosaic_0001>
module attributes {stable_mosaic.version = 11 : i64} {
  func.func @_confidence_attn_kernel(%arg0: i32, %arg1: memref<1x1x8xf32, #tpu.memory_space<vmem>>, %arg2: memref<1x1x8xf32, #tpu.memory_space<vmem>>, %arg3: memref<1x1x8x32xbf16, #tpu.memory_space<vmem>>, %arg4: memref<32x384xbf16, #tpu.memory_space<vmem>>, %arg5: memref<1x384xf32, #tpu.memory_space<vmem>>, %arg6: memref<2xf32, #tpu.memory_space<smem>>, %arg7: memref<1x1x8xf32, #tpu.memory_space<vmem>>) attributes {dimension_semantics = [#tpu.dimension_semantics<parallel>], iteration_bounds = array<i64: 2>, scalar_prefetch = 0 : i64, scratch_operands = 0 : i64, tpu.core_type = #tpu.core_type<tc>, window_params = [{transform_indices = @transform_0, window_bounds = array<i64: 1, 1, 8>}, {transform_indices = @transform_1, window_bounds = array<i64: 1, 1, 8>}, {transform_indices = @transform_2, window_bounds = array<i64: 1, 1, 8, 32>}, {pipeline_mode = #tpu.pipeline_mode<synchronous>, transform_indices = @transform_3, window_bounds = array<i64: 32, 384>}, {pipeline_mode = #tpu.pipeline_mode<synchronous>, transform_indices = @transform_4, window_bounds = array<i64: 1, 384>}, {transform_indices = @transform_5, window_bounds = array<i64: 2>}, {transform_indices = @transform_6, window_bounds = array<i64: 1, 1, 8>}]} {
    %c0 = arith.constant 0 : index
    %c0_0 = arith.constant 0 : index
    %c0_1 = arith.constant 0 : index
    %c0_2 = arith.constant 0 : index
    %0 = vector.load %arg3[%c0, %c0_0, %c0_1, %c0_2] : memref<1x1x8x32xbf16, #tpu.memory_space<vmem>>, vector<1x1x8x32xbf16>
    %1 = vector.shape_cast %0 : vector<1x1x8x32xbf16> to vector<1x8x32xbf16>
    %2 = vector.shape_cast %1 : vector<1x8x32xbf16> to vector<8x32xbf16>
    %c0_3 = arith.constant 0 : index
    %c0_4 = arith.constant 0 : index
    %3 = vector.load %arg4[%c0_3, %c0_4] : memref<32x384xbf16, #tpu.memory_space<vmem>>, vector<32x384xbf16>
    %cst = arith.constant dense<0.000000e+00> : vector<8x384xf32>
    %4 = tpu.matmul %2, %3, %cst {dimension_numbers = #tpu.dot_dimension_numbers<[1], [0], [0], [1], [0, 0, 1, 1], [], []>} : vector<8x32xbf16>, vector<32x384xbf16>, vector<8x384xf32> -> vector<8x384xf32>
    %c0_5 = arith.constant 0 : index
    %c0_6 = arith.constant 0 : index
    %5 = vector.load %arg5[%c0_5, %c0_6] : memref<1x384xf32, #tpu.memory_space<vmem>>, vector<1x384xf32>
    %6 = vector.broadcast %5 : vector<1x384xf32> to vector<8x384xf32>
    %7 = arith.addf %4, %6 : vector<8x384xf32>
    %8 = vector.shape_cast %7 : vector<8x384xf32> to vector<1x8x384xf32>
    %9 = vector.extract_strided_slice %8 {offsets = [0, 0, 0], sizes = [1, 8, 128], strides = [1, 1, 1]} : vector<1x8x384xf32> to vector<1x8x128xf32>
    %10 = arith.truncf %9 : vector<1x8x128xf32> to vector<1x8x128xbf16>
    %11 = vector.extract_strided_slice %8 {offsets = [0, 0, 128], sizes = [1, 8, 128], strides = [1, 1, 1]} : vector<1x8x384xf32> to vector<1x8x128xf32>
    %12 = arith.truncf %11 : vector<1x8x128xf32> to vector<1x8x128xbf16>
    %13 = vector.extract_strided_slice %8 {offsets = [0, 0, 256], sizes = [1, 8, 1], strides = [1, 1, 1]} : vector<1x8x384xf32> to vector<1x8x1xf32>
    %14 = vector.shape_cast %13 : vector<1x8x1xf32> to vector<1x8xf32>
    %15 = vector.extract_strided_slice %8 {offsets = [0, 0, 257], sizes = [1, 8, 1], strides = [1, 1, 1]} : vector<1x8x384xf32> to vector<1x8x1xf32>
    %16 = vector.shape_cast %15 : vector<1x8x1xf32> to vector<1x8xf32>
    "tpu.trace_start"() <{level = 10 : i32, message = "bqd,bkd->bqk"}> : () -> ()
    %cst_7 = arith.constant dense<0.000000e+00> : vector<1x8x8xf32>
    %17 = tpu.matmul %10, %12, %cst_7 {dimension_numbers = #tpu.dot_dimension_numbers<[2], [2], [1], [1], [0, 0, 0, 1, 1, 1], [0], [0]>} : vector<1x8x128xbf16>, vector<1x8x128xbf16>, vector<1x8x8xf32> -> vector<1x8x8xf32>
    "tpu.trace_stop"() : () -> ()
    %c0_8 = arith.constant 0 : index
    %c0_9 = arith.constant 0 : index
    %c0_10 = arith.constant 0 : index
    %18 = vector.load %arg1[%c0_8, %c0_9, %c0_10] : memref<1x1x8xf32, #tpu.memory_space<vmem>>, vector<1x1x8xf32>
    %19 = vector.shape_cast %18 : vector<1x1x8xf32> to vector<1x8xf32>
    %20 = vector.shape_cast %19 : vector<1x8xf32> to vector<1x1x8xf32>
    %cst_11 = arith.constant 5.000000e-01 : f32
    %21 = vector.broadcast %cst_11 : f32 to vector<1x1x8xf32>
    %22 = arith.cmpf olt, %20, %21 : vector<1x1x8xf32>
    %cst_12 = arith.constant 0xFF800000 : f32
    %23 = vector.shape_cast %22 : vector<1x1x8xi1> to vector<1x1x8xi1>
    %24 = vector.broadcast %23 : vector<1x1x8xi1> to vector<1x8x8xi1>
    %25 = vector.broadcast %cst_12 : f32 to vector<1x8x8xf32>
    %26 = arith.select %24, %25, %17 : vector<1x8x8xi1>, vector<1x8x8xf32>
    %cst_13 = arith.constant dense<0xFF800000> : vector<1x8xf32>
    %27 = vector.multi_reduction <maximumf>, %26, %cst_13 [2] : vector<1x8x8xf32> to vector<1x8xf32>
    %28 = vector.shape_cast %27 : vector<1x8xf32> to vector<1x8x1xf32>
    %29 = vector.broadcast %28 : vector<1x8x1xf32> to vector<1x8x8xf32>
    %30 = arith.subf %26, %29 : vector<1x8x8xf32>
    %31 = math.exp %30 : vector<1x8x8xf32>
    %cst_14 = arith.constant dense<0.000000e+00> : vector<1x8xf32>
    %32 = vector.multi_reduction <add>, %31, %cst_14 [2] : vector<1x8x8xf32> to vector<1x8xf32>
    %33 = vector.shape_cast %14 : vector<1x8xf32> to vector<1x1x8xf32>
    %34 = vector.broadcast %33 : vector<1x1x8xf32> to vector<1x8x8xf32>
    %35 = arith.mulf %31, %34 : vector<1x8x8xf32>
    %cst_15 = arith.constant dense<0.000000e+00> : vector<1x8xf32>
    %36 = vector.multi_reduction <add>, %35, %cst_15 [2] : vector<1x8x8xf32> to vector<1x8xf32>
    %37 = tpu.reciprocal %32 {approx = true} : vector<1x8xf32> -> vector<1x8xf32>
    %38 = arith.mulf %36, %37 : vector<1x8xf32>
    %39 = arith.addf %38, %16 : vector<1x8xf32>
    %c0_16 = arith.constant 0 : index
    %c0_17 = arith.constant 0 : index
    %c0_18 = arith.constant 0 : index
    %40 = vector.load %arg2[%c0_16, %c0_17, %c0_18] : memref<1x1x8xf32, #tpu.memory_space<vmem>>, vector<1x1x8xf32>
    %41 = vector.shape_cast %40 : vector<1x1x8xf32> to vector<1x8xf32>
    %c0_19 = arith.constant 0 : index
    %42 = memref.load %arg6[%c0_19] : memref<2xf32, #tpu.memory_space<smem>>
    %43 = vector.broadcast %42 : f32 to vector<1x8xf32>
    %44 = arith.mulf %41, %43 : vector<1x8xf32>
    %45 = arith.addf %39, %44 : vector<1x8xf32>
    %c1 = arith.constant 1 : index
    %46 = memref.load %arg6[%c1] : memref<2xf32, #tpu.memory_space<smem>>
    %47 = vector.broadcast %46 : f32 to vector<1x8xf32>
    %48 = arith.addf %45, %47 : vector<1x8xf32>
    %cst_20 = arith.constant 5.000000e-01 : f32
    %49 = vector.broadcast %cst_20 : f32 to vector<1x8xf32>
    %50 = arith.cmpf olt, %19, %49 : vector<1x8xf32>
    %cst_21 = arith.constant 0x7FC00000 : f32
    %51 = vector.broadcast %cst_21 : f32 to vector<1x8xf32>
    %52 = arith.select %50, %51, %48 : vector<1x8xi1>, vector<1x8xf32>
    %53 = arith.negf %52 : vector<1x8xf32>
    %54 = math.exp %53 : vector<1x8xf32>
    %cst_22 = arith.constant 1.000000e+00 : f32
    %55 = vector.broadcast %cst_22 : f32 to vector<1x8xf32>
    %56 = arith.addf %55, %54 : vector<1x8xf32>
    %57 = arith.divf %55, %56 : vector<1x8xf32>
    %58 = vector.shape_cast %57 : vector<1x8xf32> to vector<8xf32>
    %c0_23 = arith.constant 0 : index
    %c0_24 = arith.constant 0 : index
    %c0_25 = arith.constant 0 : index
    %59 = vector.load %arg7[%c0_23, %c0_24, %c0_25] : memref<1x1x8xf32, #tpu.memory_space<vmem>>, vector<1x1x8xf32>
    %60 = vector.shape_cast %59 : vector<1x1x8xf32> to vector<8xf32>
    %61 = vector.shape_cast %58 : vector<8xf32> to vector<1x1x8xf32>
    tpu.vector_store %arg7[%c0_23, %c0_24, %c0_25], %61 {strides = array<i32>} : memref<1x1x8xf32, #tpu.memory_space<vmem>>, vector<1x1x8xf32>,
    return
  }
  func.func @transform_0(%arg0: i32) -> (i32, i32, i32) {
    %c0_i32 = arith.constant 0 : i32
    %c0_i32_0 = arith.constant 0 : i32
    %c0_i32_1 = arith.constant 0 : i32
    return %arg0, %c0_i32, %c0_i32_0 : i32, i32, i32
  }
  func.func @transform_1(%arg0: i32) -> (i32, i32, i32) {
    %c0_i32 = arith.constant 0 : i32
    %c0_i32_0 = arith.constant 0 : i32
    %c0_i32_1 = arith.constant 0 : i32
    return %arg0, %c0_i32, %c0_i32_0 : i32, i32, i32
  }
  func.func @transform_2(%arg0: i32) -> (i32, i32, i32, i32) {
    %c0_i32 = arith.constant 0 : i32
    %c0_i32_0 = arith.constant 0 : i32
    %c0_i32_1 = arith.constant 0 : i32
    %c0_i32_2 = arith.constant 0 : i32
    return %arg0, %c0_i32, %c0_i32_0, %c0_i32_1 : i32, i32, i32, i32
  }
  func.func @transform_3(%arg0: i32) -> (i32, i32) {
    %c0_i32 = arith.constant 0 : i32
    %c0_i32_0 = arith.constant 0 : i32
    %c0_i32_1 = arith.constant 0 : i32
    return %c0_i32, %c0_i32_0 : i32, i32
  }
  func.func @transform_4(%arg0: i32) -> (i32, i32) {
    %c0_i32 = arith.constant 0 : i32
    %c0_i32_0 = arith.constant 0 : i32
    %c0_i32_1 = arith.constant 0 : i32
    return %c0_i32, %c0_i32_0 : i32, i32
  }
  func.func @transform_5(%arg0: i32) -> i32 {
    %c0_i32 = arith.constant 0 : i32
    %c0_i32_0 = arith.constant 0 : i32
    return %c0_i32 : i32
  }
  func.func @transform_6(%arg0: i32) -> (i32, i32, i32) {
    %c0_i32 = arith.constant 0 : i32
    %c0_i32_0 = arith.constant 0 : i32
    %c0_i32_1 = arith.constant 0 : i32
    return %arg0, %c0_i32, %c0_i32_0 : i32, i32, i32
  }
}

</mosaic_0001>

<bundles_post_ra>
// kernel: tpu_custom_call.1
= control target key start
LH: loop header
LB: loop body
LE: loop exit
PB: predicated region body
PF: predicated region fallthrough
CT: control target
= control target key end

     0   :  { %s1510_s0 = inlined_call_operand.hbm [shape: f32[2,1,8], index: 0, kind: input, shape index: {}]   ;;  %s1511_s1 = inlined_call_operand.vmem [shape: f32[2,1,8], index: 1, kind: input, shape index: {}]   ;;  %s1512_s2 = inlined_call_operand.hbm [shape: bf16[2,1,8,32], index: 2, kind: input, shape index: {}]   ;;  %s1513_s3 = inlined_call_operand.hbm [shape: bf16[32,384], index: 3, kind: input, shape index: {}]   ;;  %s1514_s4 = inlined_call_operand.vmem [shape: f32[1,384], index: 4, kind: input, shape index: {}]   ;;  %s1515_s5 = inlined_call_operand.vmem [shape: f32[2], index: 5, kind: input, shape index: {}]   ;;  %s1516_s6 = inlined_call_operand.hbm [shape: f32[2,1,8], index: 6, kind: output, shape index: {}]  }
   0x1   :  { %1521 = sst [smem:[#allocation16_spill]] %s1510_s0 }
   0x2   :  { %1522 = sst [smem:[#allocation17_spill]] %s1513_s3 }
   0x3   :  { %11 = vsyncpa [#allocation3], 0 }
   0x4   :  { %13 = vsyncpa [#allocation3 + $0x1], 0 }
   0x5   :  { %14 = vsyncpa [#allocation7], 0 }
   0x6   :  { %16 = vsyncpa [#allocation7 + $0x1], 0 }
   0x7   :  { %17 = vsyncpa [#allocation5], 0 }
   0x8   :  { %18 = vsyncpa [#allocation4], 0 }
   0x9   :  { %20 = vsyncpa [#allocation4 + $0x1], 0  ;;  %s1227_s21 = smov 0   ;;  %s1229_s22 = smov 0  }
   0xa   :  { %s1231_s23 = smov 0   ;;  %s1233_s24 = smov 0  }
   0xb LB: > { %s1248_s25 = sadd.s32 4294967295, %s1178_s24   ;;  %s853_s26 = sadd.s32 4294967294, %s1178_s24   ;;  %s1178_s24 = sphi %s1233_s24, %s1545_s24   ;;  %s1174_s23 = sphi %s1231_s23, %s1544_s23   ;;  %s1170_s22 = sphi %s1229_s22, %s1543_s22   ;;  %s1166_s21 = sphi %s1227_s21, %s1542_s21  }
   0xc   : > { %p46_p0 = scmp.ne.s32.totalorder %s1170_s22, %s1166_s21  ;;  %p1517_p1 = scmp.eq.s32.totalorder %s1248_s25, 0 }
   0xd   : > { %p191_p3 = scmp.eq.s32.totalorder %s853_s26, 1  ;;  %p854_p5 = scmp.ge.s32.totalorder %s1178_s24, 1 }
   0xe   : > { %p1257_p4 = por %p1517_p1, %p46_p0  ;;  %p198_p7 = scmp.lt.s32.totalorder %s1178_s24, 3 }
   0xf   : > { %p1262_p6 = por %p191_p3, %p46_p0  ;;  %s1180_s30 = smov [#allocation8]  }
  0x10   : > { %s1523_s27 = scalar_select %p1257_p4, 1, 0 }
  0x11   : > { %s1524_s28 = scalar_select %p1262_p6, 1, 0 }
  0x12   : > { %p1267_p8 = pnand %p854_p5, %p198_p7  ;;  %s210_s7 = sshll.u32 %s1180_s30, 4  ;;  %s211_s7 = int_to_ptr.vmem [resolvable:$true] %s210_s7 }
  0x13   : > { %s227_s10 = sshll.u32 %s1515_s5, 4  ;;  %s1527_s3 = sld [smem:[#allocation17_spill]]  ;;  %s1283_s10 = int_to_ptr.vmem [resolvable:$true] %s227_s10 }
  0x14   : > { %s1525_s29 = scalar_select %p1267_p8, 1, 0 }
  0x15   : > { %p913_p9 = pneg %p1267_p8 }
  0x17   : > { %p1279_p11 = pnand %p913_p9, %p1517_p1 }
  0x19   : > { %s997_s14 = scalar_lea.hbm %s1527_s3, 768  ;;  %p999_p13 = pneg %p1279_p11 }
  0x1a   : > { %p998_p12 = scmp.ne.s32.totalorder %s1527_s3, %s997_s14  ;;  %p1004_p5 = scmp.lt.u32.totalorder %s997_s14, %s1527_s3 }
  0x1c   : > { %p1000_p0 = pnand %p999_p13, %p998_p12 }
  0x1e   : > { %p1001_p3 = pneg %p1000_p0 }
  0x20   : > { %p1006_p7 = pnand %p1004_p5, %p1001_p3 }
  0x22   : > { %1009 = shalt.err (!%p1006_p7)
}
  0x23   : > { %s1010_s19 = scalar_lea.vmem %s211_s7, 768  ;;  %p1018_p2 = scmp.lt.s32.totalorder %s211_s7, %s211_s7 }
  0x24   : > { %p1011_p9 = scmp.ne.s32.totalorder %s211_s7, %s1010_s19  ;;  %p1019_p6 = scmp.lt.s32.totalorder %s1010_s19, %s1010_s19 }
  0x26   : > { %p1013_p10 = pnand %p1011_p9, %p999_p13  ;;  %p1020_p4 = por %p1019_p6, %p1018_p2 }
  0x28   : > { %p1014_p1 = pneg %p1013_p10 }
  0x2a   : > { %p1021_p8 = pnand %p1020_p4, %p1014_p1 }
  0x2c   : > { %1024 = shalt.err (!%p1021_p8)
}
  0x2d   : > { %s1181_s20 = smov 192   ;;  %s1182_s26 = smov 12  }
  0x2e   : > { %916 = dma.hbm_to_vmem [thread:$0]  (!%p1279_p11), %s1527_s3, 768, %s211_s7, [#allocation7], %s1181_s20, %s1181_s20, %s1182_s26  }
  0x2f   : > { %s1025_s9 = scalar_lea.vmem %s1283_s10, 16  ;;  %p1033_p1 = scmp.lt.s32.totalorder %s1283_s10, %s1283_s10 }
  0x30   : > { %p1026_p12 = scmp.ne.s32.totalorder %s1283_s10, %s1025_s9  ;;  %p1034_p4 = scmp.lt.s32.totalorder %s1025_s9, %s1025_s9 }
  0x32   : > { %p1028_p10 = pnand %p1026_p12, %p999_p13  ;;  %p1035_p6 = por %p1034_p4, %p1033_p1 }
  0x34   : > { %p1029_p2 = pneg %p1028_p10 }
  0x36   : > { %p1036_p8 = pnand %p1035_p6, %p1029_p2 }
  0x38   : > { %1039 = shalt.err (!%p1036_p8)
}
  0x39   : > { %s1183_s12 = smov [#allocation9]   ;;  %s1318_s7 = sadd.s32 1, %s1178_s24  }
  0x3a   : > { %919 = dma.vmem_to_smem (!%p1279_p11), %s1283_s10, 16, %s1183_s12, [#allocation5]  }
  0x3b   : > { %s33_s13 = sadd.s32 1, %s1174_s23  ;;  %s30_s14 = ssub.s32 %s1178_s24, %s1318_s7 }
  0x3c   : > { %p40_p13 = scmp.ne.s32.totalorder %s1174_s23, %s1170_s22  ;;  %p31_p0 = scmp.eq.s32.totalorder %s30_s14, 0 }
  0x3d   : > { %p41_p3 = scmp.eq.s32.totalorder %s1178_s24, 0  ;;  %p1528_p5 = scmp.eq.s32.totalorder %s1248_s25, 1 }
  0x3e   : > { %p933_p9 = scmp.lt.s32.totalorder %s1178_s24, 2  ;;  %s1337_s16 = sand.u32 1, %s1174_s23  }
  0x3f   : > { %p1328_p7 = por %p1528_p5, %p40_p13  ;;  %p42_p12 = por %p41_p3, %p40_p13 }
  0x40   : > { %s1334_s15 = scalar_select %p31_p0, %s1174_s23, %s33_s13  }
  0x41   : > { %s1529_s11 = scalar_select %p1328_p7, 1, 0 }
  0x42   : > { %s858_s10 = sshll.u32 %s1178_s24, 4  ;;  %s241_s17 = scalar_lea.vmem [#allocation2], %s1337_s16 }
  0x43   : > { %s248_s18 = sshll.u32 %s241_s17, 4  ;;  %s1530_s0 = sld [smem:[#allocation16_spill]]  ;;  %s1346_s18 = int_to_ptr.vmem [resolvable:$true] %s248_s18 }
  0x44   : > { %p1348_p11 = pnand %p933_p9, %p42_p12  ;;  %s859_s9 = sshll.u32 %s1337_s16, 2 }
  0x45   : > { %s239_s12 = scalar_lea.sflag [#allocation3], %s1337_s16 }
  0x46   : > { %p1042_p2 = pneg %p1348_p11 }
  0x49   : > { %s1344_s26 = scalar_lea.hbm %s1530_s0, %s858_s10  ;;  %s1045_s17 = scalar_lea.hbm %s1530_s0, 32 }
  0x4a   : > { %s1040_s13 = scalar_lea.hbm %s1344_s26, 16  ;;  %p1046_p6 = scmp.lt.u32.totalorder %s1344_s26, %s1530_s0 }
  0x4b   : > { %p1041_p10 = scmp.ne.s32.totalorder %s1344_s26, %s1040_s13  ;;  %p1047_p8 = scmp.lt.u32.totalorder %s1045_s17, %s1040_s13 }
  0x4c   : > { %p1049_p0 = scmp.lt.u32.totalorder %s1040_s13, %s1344_s26 }
  0x4d   : > { %p1043_p1 = pnand %p1042_p2, %p1041_p10  ;;  %p1048_p13 = por %p1047_p8, %p1046_p6 }
  0x4f   : > { %p1044_p4 = pneg %p1043_p1  ;;  %p1050_p3 = por %p1049_p0, %p1048_p13 }
  0x51   : > { %p1051_p5 = pnand %p1050_p3, %p1044_p4 }
  0x53   : > { %1054 = shalt.err (!%p1051_p5)
}
  0x54   : > { %s1055_s8 = scalar_lea.vmem %s1346_s18, 16  ;;  %s1184_s14 = smov [#allocation2]  }
  0x55   : > { %p1056_p9 = scmp.ne.s32.totalorder %s1346_s18, %s1055_s8  ;;  %s1060_s10 = sshll.u32 %s1184_s14, 4  ;;  %s1061_s10 = int_to_ptr.vmem [resolvable:$false] %s1060_s10 }
  0x56   : > { %s1062_s19 = scalar_lea.vmem %s1061_s10, 32  ;;  %p1063_p1 = scmp.lt.s32.totalorder %s1346_s18, %s1061_s10 }
  0x57   : > { %p1058_p12 = pnand %p1056_p9, %p1042_p2  ;;  %p1064_p6 = scmp.lt.s32.totalorder %s1062_s19, %s1055_s8 }
  0x59   : > { %p1059_p10 = pneg %p1058_p12  ;;  %p1065_p8 = por %p1064_p6, %p1063_p1 }
  0x5b   : > { %p1066_p13 = pnand %p1065_p8, %p1059_p10 }
  0x5d   : > { %1069 = shalt.err (!%p1066_p13)
}
  0x5e   : > { %923 = dma.hbm_to_vmem [thread:$0]  (!%p1348_p11), %s1344_s26, 16, %s1346_s18, %s239_s12  }
  0x5f   : > { %s860_s13 = sshll.u32 %s1178_s24, 6  ;;  %s265_s17 = scalar_lea.vmem [#allocation6], %s859_s9 }
  0x60   : > { %s272_s20 = sshll.u32 %s265_s17, 4  ;;  %s1386_s8 = scalar_lea.hbm %s1512_s2, %s860_s13  ;;  %s273_s20 = int_to_ptr.vmem [resolvable:$true] %s272_s20 }
  0x61   : > { %s1532_s10 = sand.u32 1, %s1178_s24   ;;  %s1070_s3 = scalar_lea.hbm %s1386_s8, 64 }
  0x62   : > { %s262_s19 = scalar_lea.sflag [#allocation7], %s1532_s10  ;;  %p1071_p4 = scmp.ne.s32.totalorder %s1386_s8, %s1070_s3 }
  0x63   : > { %s1075_s26 = scalar_lea.hbm %s1512_s2, 128  ;;  %p1076_p5 = scmp.lt.u32.totalorder %s1386_s8, %s1512_s2 }
  0x64   : > { %p1073_p0 = pnand %p1071_p4, %p1042_p2  ;;  %p1077_p9 = scmp.lt.u32.totalorder %s1075_s26, %s1070_s3 }
  0x65   : > { %p1079_p10 = scmp.lt.u32.totalorder %s1070_s3, %s1386_s8 }
  0x66   : > { %p1074_p3 = pneg %p1073_p0  ;;  %p1078_p12 = por %p1077_p9, %p1076_p5 }
  0x68   : > { %p1080_p1 = por %p1079_p10, %p1078_p12 }
  0x6a   : > { %p1081_p6 = pnand %p1080_p1, %p1074_p3 }
  0x6c   : > { %1084 = shalt.err (!%p1081_p6)
}
  0x6d   : > { %s1085_s12 = scalar_lea.vmem %s273_s20, 64  ;;  %s1185_s13 = smov [#allocation6]  }
  0x6e   : > { %p1086_p8 = scmp.ne.s32.totalorder %s273_s20, %s1085_s12  ;;  %s1090_s17 = sshll.u32 %s1185_s13, 4  ;;  %s1091_s17 = int_to_ptr.vmem [resolvable:$false] %s1090_s17 }
  0x6f   : > { %s1092_s14 = scalar_lea.vmem %s1091_s17, 128  ;;  %p1093_p0 = scmp.lt.s32.totalorder %s273_s20, %s1091_s17 }
  0x70   : > { %p1088_p13 = pnand %p1086_p8, %p1042_p2  ;;  %p1094_p7 = scmp.lt.s32.totalorder %s1092_s14, %s1085_s12 }
  0x72   : > { %p1089_p4 = pneg %p1088_p13  ;;  %p1095_p5 = por %p1094_p7, %p1093_p0 }
  0x74   : > { %p1096_p9 = pnand %p1095_p5, %p1089_p4 }
  0x76   : > { %1099 = shalt.err (!%p1096_p9)
}
  0x77   : > { %926 = dma.hbm_to_vmem [thread:$0]  (!%p1348_p11), %s1386_s8, 64, %s273_s20, %s262_s19  }
  0x78   : > { %p1533_p3 = scmp.ne.s32.totalorder %s1525_s29, 0 }
  0x79   : > { %s1412_s3 = sand.u32 (!%p1533_p3), 1, %s1170_s22   ;;  %p1534_p2 = scmp.ne.s32.totalorder (!%p1533_p3), %s1523_s27, 0 }
  0x7a   : > { %281 = sbr.rel (%p1533_p3) target bundleno = 1102 (0x44e), region = 44  ;;  %s284_s10 = scalar_lea.sflag (!%p1533_p3), [#allocation3], %s1412_s3 }
  0x7b   : > { %s286_s16 = scalar_lea.vmem (!%p1533_p3), [#allocation2], %s1412_s3 }
  0x81   : > { %1145 = dma.done.wait (%p1534_p2), %s284_s10, 16  }
  0x82   : > { %1147 = vsyncadd (%p1534_p2), %s284_s10, 4294967280  ;;  %s291_s30 = sand.u32 1, %s1248_s25   ;;  %s862_s20 = sshll.u32 %s1412_s3, 2 }
  0x83   : > { %s292_s29 = scalar_lea.sflag [#allocation7], %s291_s30  ;;  %s295_s8 = scalar_lea.vmem [#allocation6], %s862_s20 }
  0x84   : > { %1149 = dma.done.wait (%p1534_p2), %s292_s29, 64  }
  0x85   : > { %1151 = vsyncadd (%p1534_p2), %s292_s29, 4294967232  ;;  %p1535_p7 = scmp.eq.s32.totalorder %s1248_s25, 0 }
  0x87   : > { %1153 = dma.done.wait (%p1535_p7), [#allocation7], 768   ;;  %p1536_p11 = pmov %p1535_p7 }
  0x88   : > { %p1537_p12 = pmov %p1535_p7 }
  0x89   : > { %1155 = vsyncadd (%p1536_p11), [#allocation7], 4294966528 }
  0x8a   : > { %1157 = dma.done.wait (%p1537_p12), [#allocation5], 16   ;;  %p1538_p10 = pmov %p1535_p7 }
  0x8c   : > { %1159 = vsyncadd (%p1538_p10), [#allocation5], 4294967280 }
  0x8d   : > { %308 = sfence }
  0x8e   : > { %v981_v0 = vld [vmem:[#allocation8 + $0x4] ss:$12 sps:$4 sm:$0xff]   ;;  %v983_v1 = vld [vmem:[#allocation8] ss:$12 sps:$4 sm:$0xff]   ;;  %v1186_v2 = vmov 0   ;;  %vm401_vm0 = vcmask 261120   ;;  %v354_v9 = vlaneseq }
  0x8f   : > { %437 = vmatprep.mubr.bf16.mxu0 %v1186_v2  ;;  %978 = vset.pattern.permute.xlu0 %v1186_v2  ;;  %v984_v3 = vld [vmem:[#allocation8 + $0x1c] ss:$12 sps:$4 sm:$0xff]   ;;  %v986_v4 = vld [vmem:[#allocation8 + $0x18] ss:$12 sps:$4 sm:$0xff]   ;;  %v1187_v6 = vmov 0.0   ;;  %vm1188_vm1 = vmmov 0  }
  0x90   : > { %405 = vmatprep.subr.bf16.mxu0 %v981_v0  ;;  %v343_v5 = vld [vmem:[%s295_s8] sm:$0xf]  ;;  %885 = vmatprep.subr.bf16.mxu1 %v1187_v6  ;;  %v987_v7 = vld [vmem:[#allocation8 + $0x8] ss:$12 sps:$4 sm:$0xff]   ;;  %v988_v8 = vld [vmem:[#allocation8 + $0x20] ss:$12 sps:$4 sm:$0xff]  }
  0x91   : > { %406 = vmatpush1.bf16.msra.mxu0 %v983_v1  ;;  %889 = vmatprep.mubr.msk.bf16.mxu1 %vm1188_vm1, %v1187_v6  ;;  %v1434_v10 = vshrl.u32 %v354_v9, 7  ;;  %v352_v12 = vld [vmem:[%s1514_s4] sm:$0x7]  ;;  %vm537_vm4 = vcmask 64512   ;;  %v552_v43 = vand.u32 127, %v354_v9  ;;  %p339_p1 = scmp.lt.s32.totalorder %s1248_s25, 1 }
  0x92   : > { %407 = vmatprep.subr.bf16.mxu0 %v984_v3  ;;  %886 = vmatpush3.bf16.msra.mxu1 %v987_v7  ;;  %v1443_v28 = vld [vmem:[%s286_s16] sm:$0x1]  ;;  %s578_s18 = sld [smem:[#allocation9]]  ;;  %v1189_v55 = vmov 1   ;;  %s873_s13 = sld [smem:[#allocation9 + $0x1]]  ;;  %vm722_vm5 = vcmask 57344  }
  0x93   : > { %887 = vmatprep.subr.bf16.mxu1 %v1187_v6  ;;  %v360_v11 = vsub.s32 1, %v1434_v10  ;;  %v356_v14 = vsub.s32 0, %v1434_v10  ;;  %vm529_vm2 = vcmp.lt.f32.partialorder %v1443_v28, 0.5  ;;  %v364_v37 = vsub.s32 2, %v1434_v10  ;;  %s340_s26 = scalar_select %p339_p1, %s1248_s25, 1  ;;  %979 = vset.pattern.permute.xlu1 %v1189_v55 }
  0x94   : > { %v530_v29 = vsel %vm529_vm2, 1, %v1186_v2  ;;  %v555_v44 = vsub.s32 %v552_v43, %v1434_v10  ;;  %v1190_v57 = vmov 1966171168   ;;  %s877_s17 = sshll.u32 %s1248_s25, 4  ;;  %s338_s14 = scalar_lea.vmem [#allocation10], %s1412_s3 }
  0x95   : > { %408 = vmatpush1.bf16.msra.mxu0 %v986_v4  ;;  %v361_v13 = vrot.slane %v352_v12, %v360_v11  ;;  %v357_v19 = vrot.slane %v352_v12, %v356_v14  ;;  %v534_v30 = vrot.slane %v530_v29, %v356_v14  ;;  %v365_v38 = vrot.slane %v352_v12, %v364_v37  ;;  %s341_s12 = scalar_lea.vmem %s1511_s1, %s340_s26  ;;  %s737_s10 = sshll.u32 %s338_s14, 4  ;;  %s1468_s10 = int_to_ptr.vmem [resolvable:$true] %s737_s10 }
  0x96   : > { %893 = vmatprep.subr.bf16.mxu0 %v1187_v6  ;;  %888 = vmatpush3.bf16.msra.mxu1 %v988_v8  ;;  %v577_v51 = vld [vmem:[%s341_s12] sm:$0x1]  ;;  %v597_v58 = vunpack.c.l.s4 %v1190_v57  ;;  %s1466_s20 = scalar_lea.hbm %s1516_s6, %s877_s17  ;;  %s725_s29 = scalar_lea.sflag [#allocation4], %s1412_s3 }
  0x97   : > { %vm535_vm3 = vcmp.eq.s32.totalorder %v534_v30, 1  ;;  %s1100_s8 = scalar_lea.vmem %s1468_s10, 16  ;;  %p1539_p8 = scmp.ne.s32.totalorder %s1529_s11, 0 }
  0x98   : > { %871 = vmatmul.mubr.msk.bf16.vlgmr.msra.gmra.mrb[0].mxu0 %vm401_vm0, %v343_v5  ;;  %v579_v52 = vstv %s578_s18  ;;  %v598_v61 = vunpack.c.0.s8 %v597_v58  ;;  %v592_v1 = vstv %s873_s13  ;;  %p1101_p6 = scmp.ne.s32.totalorder %s1468_s10, %s1100_s8  ;;  %s1191_s25 = smov [#allocation10]  }
  0x99   : > { %895 = vmatprep.mubr.msk.bf16.mxu0 %vm1188_vm1, %v1187_v6  ;;  %890 = vmatmul.mubr.msk.bf16.vlgmr.msra.gmra.mrb[0].mxu1 %vm401_vm0, %v343_v5  ;;  %v580_v53 = vmul.f32 %v579_v52, %v577_v51  ;;  %s1104_s27 = sshll.u32 %s1191_s25, 4  ;;  %s1105_s27 = int_to_ptr.vmem [resolvable:$false] %s1104_s27 }
  0x9a   : > { %v601_v2 = vsub.s32 %v598_v61, %v1434_v10  ;;  %p1102_p13 = pnand %p1101_p6, %p1539_p8  ;;  %s1106_s19 = scalar_lea.vmem %s1105_s27, 32 }
  0x9b   : > { %v585_v54 = vrot.slane %v580_v53, %v356_v14  ;;  %p1107_p0 = scmp.lt.s32.totalorder %s1468_s10, %s1105_s27  ;;  %p1108_p5 = scmp.lt.s32.totalorder %s1106_s19, %s1100_s8 }
  0x9c   : > { %p1103_p4 = pneg %p1102_p13 }
  0x9d   : > { %p1109_p9 = por %p1108_p5, %p1107_p0 }
  0x9f   : > { %p1110_p3 = pnand %p1109_p9, %p1103_p4 }
 0x16b   : > { %v439_v15 = vpop.f32.mrb[0].mxu0 }
 0x16c   : > { %v441_v16 = vpop.f32.mrb[1].mxu0  ;;  %v440_v22 = vadd.f32 %v439_v15, %v357_v19  ;;  %v480_v24 = vpop.f32.mrb[0].mxu1 }
 0x16d   : > { %v442_v17 = vadd.f32 %v441_v16, %v361_v13  ;;  %v443_v18 = vpop.f32.mrb[2].mxu0  ;;  %v891_v25 = vpop.f32.mrb[1].mxu1  ;;  %v481_v39 = vadd.f32 %v480_v24, %v365_v38 }
 0x16e   : > { %v444_v20 = vpop.f32.mrb[3].mxu0  ;;  %v486_v23 = vpack.c.bf16 %v440_v22, %v440_v22  ;;  %v483_v26 = vpop.f32.mrb[2].mxu1 }
 0x16f   : > { %v487_v21 = vpack.c.bf16 %v442_v17, %v442_v17  ;;  %v892_v27 = vpop.f32.mrb[3].mxu1 }
 0x171   : > { %894 = vmatpush3.bf16.xpose.msra.mxu0 %v487_v21 }
 0x178   : > { %896 = vmatmul.mubr.bf16.vlgmr.msra.gmra.mrb[4].mxu0 %v486_v23 }
 0x24b   : > { %v522_v31 = vpop.f32.mrb[4].mxu0 }
 0x24c   : > { %v536_v32 = vsel %vm535_vm3, -inf, %v522_v31  ;;  %v897_v33 = vpop.f32.mrb[5].mxu0 }
 0x24d   : > { %v525_v34 = vpop.f32.mrb[6].mxu0  ;;  %v538_v35 = vsel %vm537_vm4, %v536_v32, -inf }
 0x24e   : > { %539 = vmax.xlane.f32.xlu0 %v538_v35  ;;  %v898_v36 = vpop.f32.mrb[7].mxu0 }
 0x264   : > { %549 = vperm.xlu0 %978, %v481_v39  }
 0x268   : > { %980 = vset.pattern.permute.xlu0 %v1189_v55 }
 0x2db   : > { %v540_v40 = vpop.xlane.xlu0 %539 }
 0x2dc   : > { %v541_v41 = vsub.f32 %v536_v32, %v540_v40 }
 0x2de   : > { %v542_v42 = vmul.f32 1.442695, %v541_v41 }
 0x2e0   : > { %989 = vpow2.f32 %v542_v42 }
 0x2e3   : > { %v550_v45 = vpop.permute.xlu0 %549 }
 0x2e4   : > { %v556_v46 = vrot.slane %v550_v45, %v555_v44 }
 0x2ea   : > { %v990_v47 = vpop.eup %989 }
 0x2eb   : > { %v544_v48 = vsel %vm537_vm4, %v990_v47, 0.0  ;;  %v570_v49 = vmul.f32 %v990_v47, %v556_v46 }
 0x2ec   : > { %545 = vadd.xlane.f32.xlu1 %v544_v48 }
 0x2ed   : > { %v571_v50 = vsel %vm537_vm4, %v570_v49, 0.0 }
 0x2f0   : > { %572 = vadd.xlane.f32.xlu1 %v571_v50 }
 0x301   : > { %587 = vbcast.lane.b32.xlu1 %v585_v54, 256 }
 0x379   : > { %v546_v56 = vpop.xlane.xlu1 %545 }
 0x37a   : > { %991 = vrcp.f32 %v546_v56 }
 0x37d   : > { %v573_v59 = vpop.xlane.xlu1 %572 }
 0x381   : > { %v588_v63 = vpop.permute.xlu1 %587 }
 0x384   : > { %v992_v60 = vpop.eup %991 }
 0x385   : > { %v575_v62 = vmul.f32 %v992_v60, %v573_v59 }
 0x387   : > { %v576_v0 = vadd.f32 %v575_v62, %v481_v39 }
 0x389   : > { %v590_v3 = vadd.f32 %v588_v63, %v576_v0 }
 0x38b   : > { %v593_v4 = vadd.f32 %v592_v1, %v590_v3 }
 0x38d   : > { %v595_v5 = vcombine.high %v593_v4, %v593_v4  ;;  %v602_v6 = vrot.slane %v593_v4, %v601_v2 }
 0x38f   : > { %v609_v7 = vrot.slane %v595_v5, %v601_v2  ;;  %v610_v8 = vcombine.high %v602_v6, %v602_v6  ;;  %v618_v11 = vrot.slane %v602_v6, %v601_v2 }
 0x391   : > { %v611_v9 = vcombine.high %v609_v7, %v609_v7  ;;  %v632_v12 = vrot.slane %v610_v8, %v601_v2  ;;  %v625_v13 = vrot.slane %v609_v7, %v601_v2 }
 0x393   : > { %v639_v14 = vrot.slane %v611_v9, %v601_v2  ;;  %v644_v15 = vcombine.low %v618_v11, %v632_v12  ;;  %v874_v16 = vcombine.high %v618_v11, %v632_v12 }
 0x395   : > { %v646_v17 = vcombine.low %v625_v13, %v639_v14  ;;  %v875_v18 = vcombine.high %v625_v13, %v639_v14  ;;  %v654_v19 = vrot.slane %v644_v15, %v601_v2  ;;  %v661_v20 = vrot.slane %v874_v16, %v601_v2 }
 0x397   : > { %v668_v21 = vrot.slane %v646_v17, %v601_v2  ;;  %v675_v22 = vrot.slane %v875_v18, %v601_v2  ;;  %v676_v10 = vcombine.low %v654_v19, %v661_v20 }
 0x399   : > { %v677_v23 = vcombine.low %v668_v21, %v675_v22  ;;  %v684_v24 = vrot.slane %v676_v10, %v601_v2 }
 0x39b   : > { %v691_v25 = vrot.slane %v677_v23, %v601_v2 }
 0x39d   : > { %v692_v26 = vcombine.low %v684_v24, %v691_v25 }
 0x39f   : > { %694 = vperm.xlu1 %979, %v692_v26  }
 0x41e   : > { %v695_v27 = vpop.permute.xlu1 %694 }
 0x41f   : > { %v699_v29 = vrot.slane %v695_v27, %v555_v44 }
 0x421   : > { %v706_v30 = vrot.slane %v699_v29, %v601_v2 }
 0x423   : > { %v713_v31 = vrot.slane %v706_v30, %v601_v2 }
 0x425   : > { %v715_v32 = vsel %vm529_vm2, nan, %v713_v31 }
 0x426   : > { %v876_v33 = vmul.f32 -1.442695, %v715_v32 }
 0x428   : > { %993 = vpow2.f32 %v876_v33 }
 0x432   : > { %v994_v34 = vpop.eup %993 }
 0x433   : > { %v719_v35 = vadd.f32 1.0, %v994_v34 }
 0x435   : > { %995 = vrcp.f32 %v719_v35 }
 0x43f   : > { %v996_v28 = vpop.eup %995 }
 0x440   : > { %723 = vst.msk [vmem:[%s338_s14] sm:$0x1] %vm722_vm5, %v996_v28 }
 0x441   : > { %1113 = shalt.err (!%p1110_p3)
}
 0x442   : > { %s1114_s3 = scalar_lea.hbm %s1466_s20, 16  ;;  %s1118_s0 = scalar_lea.hbm %s1516_s6, 32 }
 0x443   : > { %p1115_p2 = scmp.ne.s32.totalorder %s1466_s20, %s1114_s3  ;;  %p1119_p12 = scmp.lt.u32.totalorder %s1466_s20, %s1516_s6 }
 0x444   : > { %p1120_p10 = scmp.lt.u32.totalorder %s1118_s0, %s1114_s3  ;;  %p1122_p6 = scmp.lt.u32.totalorder %s1114_s3, %s1466_s20 }
 0x445   : > { %p1116_p7 = pnand %p1115_p2, %p1539_p8 }
 0x446   : > { %p1121_p1 = por %p1120_p10, %p1119_p12 }
 0x447   : > { %p1117_p11 = pneg %p1116_p7 }
 0x448   : > { %p1123_p13 = por %p1122_p6, %p1121_p1 }
 0x44a   : > { %p1124_p4 = pnand %p1123_p13, %p1117_p11 }
 0x44c   : > { %1127 = shalt.err (!%p1124_p4)
}
 0x44d   : > { %911 = dma.vmem_to_hbm [thread:$0]  (%p1539_p8), %s1468_s10, 16, %s1466_s20, %s725_s29  }
 0x44e PF: > { %s749_s13 = sand.u32 1, %s1166_s21   ;;  %p1540_p0 = scmp.ne.s32.totalorder %s1524_s28, 0 }
 0x44f   : > { %p1541_p5 = scmp.ge.s32.totalorder %s1178_s24, 2  ;;  %s750_s17 = scalar_lea.sflag [#allocation4], %s749_s13 }
 0x451   : > { %p928_p9 = pnand %p1541_p5, %p1540_p0 }
 0x453   : > { %1161 = dma.done.wait (!%p928_p9), %s750_s17, 16  }
 0x454   : > { %1163 = vsyncadd (!%p928_p9), %s750_s17, 4294967280  ;;  %p23_p3 = scmp.ge.s32.totalorder %s1318_s7, 4   ;;  %s1542_s21 = smov %s1170_s22 }
 0x455   : > { %s1543_s22 = smov %s1174_s23  ;;  %s1544_s23 = smov %s1334_s15 }
 0x456   : > { %s1545_s24 = smov %s1318_s7  ;;  %25 = sbr.rel (!%p23_p3) target bundleno = 11 (0xb), region = 114 }
 0x45d   :  { %754 = vsyncpa [#allocation3], 1 }
 0x45e   :  { %756 = vsyncpa [#allocation3 + $0x1], 1 }
 0x45f   :  { %757 = vsyncpa [#allocation7], 1 }
 0x460   :  { %759 = vsyncpa [#allocation7 + $0x1], 1 }
 0x461   :  { %760 = vsyncpa [#allocation4], 1 }
 0x462   :  { %762 = vsyncpa [#allocation4 + $0x1], 1 }
 0x463   :  { %763 = vsyncpa [#allocation5], 1 }
 0x464   :  { %765 = vsyncpa [#allocation5 + $0x1], 1 }

</bundles_post_ra>
